<compile_context>
chip_gen: v7x
topology: tpu7x:2x2x1
jax: 0.10.0
libtpu: 0.0.40
codegen_flags: <defaults>
</compile_context>

<pallas_src>
import functools

import jax
import jax.numpy as jnp
from jax.experimental import pallas as pl
from jax.experimental.pallas import tpu as pltpu


def _logsigmoid(x):
    # Numerically stable log(sigmoid(x)) = min(x, 0) - log1p(exp(-|x|))
    return jnp.minimum(x, 0.0) - jnp.log1p(jnp.exp(-jnp.abs(x)))


def decoder_track_c_kernel(x_ref,            # (N, 16, HW) input, pixels on lanes
                           w_ref,            # (56, 32) f32 weight slab
                           p_ref,            # (32, 8)  f32 per-channel param slab
                           o_int_ref,        # (N, 8, HW) interior output
                           o_brd_ref,        # (8, 128)  border value (lane-broadcast)
                           *, p_int, p_full, eps1, eps2):
    n_batch = x_ref.shape[0]

    # ---- unpack packed operands (one vector load each, static slices) ------
    w = w_ref[...]
    w1 = w[0:32, 0:16].astype(jnp.bfloat16)    # Conv2d(16->32)        (Cout, Cin)
    w2 = w[32:48, :].astype(jnp.bfloat16)      # ConvTranspose2d(32->16) as (Cout, Cin)
    w3 = w[48:56, 0:16].astype(jnp.bfloat16)   # Conv2d(16->8)         (Cout, Cin)

    p = p_ref[...]
    b1, g1, be1 = p[0:32, 0:1], p[0:32, 1:2], p[0:32, 2:3]
    b2, g2, be2 = p[0:16, 3:4], p[0:16, 4:5], p[0:16, 5:6]
    b3 = p[0:8, 6:7]

    # ---- CnvMod: 1x1 conv (pad=1) + BatchNorm(train, eps=1e-3) + ReLU ------
    # bf16 matmul on MXU, f32 accumulate; batch axis statically unrolled.
    y1 = []
    for n in range(n_batch):
        xb = x_ref[n].astype(jnp.bfloat16)                              # (16, HW)
        y1.append(jnp.dot(w1, xb, preferred_element_type=jnp.float32) + b1)

    # BN1 stats are over the padded (H+2)x(W+2) grid; the border pixels of the
    # padded 1x1 conv equal the bias b1 -> closed-form correction.
    n_border = float(p_full - p_int)
    inv_pf = 1.0 / float(p_full)
    s1 = sum(jnp.sum(y, axis=1, keepdims=True) for y in y1) + n_border * b1
    mean1 = s1 * inv_pf
    db = b1 - mean1
    v1 = sum(jnp.sum((y - mean1) * (y - mean1), axis=1, keepdims=True) for y in y1) \
        + n_border * (db * db)
    var1 = v1 * inv_pf                                                   # biased (train)
    scale1 = jax.lax.rsqrt(var1 + eps1) * g1
    shift1 = be1 - mean1 * scale1
    a1 = [jnp.maximum(y * scale1 + shift1, 0.0) for y in y1]

    # ---- DecMod: ConvTranspose2d(k=1,s=1,p=1) crops the padded border, so it
    # consumes exactly the interior pixels -> plain 1x1 matmul; then
    # BatchNorm(train, eps=1e-5) + ReLU over the N*H*W interior pixels. ------
    y2 = [jnp.dot(w2, a.astype(jnp.bfloat16), preferred_element_type=jnp.float32) + b2
          for a in a1]
    inv_pi = 1.0 / float(p_int)
    mean2 = sum(jnp.sum(y, axis=1, keepdims=True) for y in y2) * inv_pi
    var2 = sum(jnp.sum((y - mean2) * (y - mean2), axis=1, keepdims=True)
               for y in y2) * inv_pi
    scale2 = jax.lax.rsqrt(var2 + eps2) * g2
    shift2 = be2 - mean2 * scale2
    a2 = [jnp.maximum(y * scale2 + shift2, 0.0) for y in y2]

    # ---- Map: 1x1 conv (pad=1) + LogSigmoid --------------------------------
    for n in range(n_batch):
        y3 = jnp.dot(w3, a2[n].astype(jnp.bfloat16),
                     preferred_element_type=jnp.float32) + b3            # (8, HW)
        o_int_ref[n] = _logsigmoid(y3)
    # Border pixels of the final padded conv see only the bias.
    o_brd_ref[...] = jnp.broadcast_to(_logsigmoid(b3), o_brd_ref.shape)


def pack_params(params):
    """One-time, layout-only packing of the module parameters into two slabs."""
    (w1, b1, g1, be1), (w2, b2, g2, be2), (w3, b3) = params
    wslab = jnp.zeros((56, 32), jnp.float32)
    wslab = wslab.at[0:32, 0:16].set(w1.reshape(32, 16))          # Conv2d (Cout, Cin)
    wslab = wslab.at[32:48, 0:32].set(w2.reshape(32, 16).T)       # ConvT (in,out) -> (out,in)
    wslab = wslab.at[48:56, 0:16].set(w3.reshape(8, 16))
    pslab = jnp.zeros((32, 8), jnp.float32)
    pslab = pslab.at[0:32, 0].set(b1)
    pslab = pslab.at[0:32, 1].set(g1)
    pslab = pslab.at[0:32, 2].set(be1)
    pslab = pslab.at[0:16, 3].set(b2)
    pslab = pslab.at[0:16, 4].set(g2)
    pslab = pslab.at[0:16, 5].set(be2)
    pslab = pslab.at[0:8, 6].set(b3)
    return wslab, pslab


def decoder_track_c(x, wslab, pslab):
    """x: (N, 16, H, W) NCHW float32 -> (N, 8, H+2, W+2)."""
    N, Cin, H, W = x.shape
    assert Cin == 16, Cin
    HW = H * W
    assert HW % 128 == 0, "lane-dense layout requires H*W to be a multiple of 128"
    assert N <= 8, "batch loop is statically unrolled in-kernel"

    P_int = N * HW                     # interior pixels
    Hp, Wp = H + 2, W + 2
    P_full = N * Hp * Wp               # pixels of the padded stage-1 activation

    x3 = x.reshape(N, Cin, HW)         # free reshape (no transpose, no HBM copy)

    kernel = functools.partial(decoder_track_c_kernel,
                               p_int=P_int, p_full=P_full,
                               eps1=1e-3, eps2=1e-5)

    out_int, out_border = pl.pallas_call(
        kernel,
        out_shape=(jax.ShapeDtypeStruct((N, 8, HW), jnp.float32),
                   jax.ShapeDtypeStruct((8, 128), jnp.float32)),
        grid=(1,),
        in_specs=[
            pl.BlockSpec((N, Cin, HW), lambda i: (0, 0, 0)),
            pl.BlockSpec((56, 32), lambda i: (0, 0)),
            pl.BlockSpec((32, 8), lambda i: (0, 0)),
        ],
        out_specs=(pl.BlockSpec((N, 8, HW), lambda i: (0, 0, 0)),
                   pl.BlockSpec((8, 128), lambda i: (0, 0))),
        compiler_params=pltpu.CompilerParams(
            dimension_semantics=("arbitrary",)),
    )(x3, wslab, pslab)

    # Layout-only epilogue: one fused broadcast + interior scatter.
    interior = out_int.reshape(N, 8, H, W)                 # free reshape
    border = out_border[:, 0].reshape(1, 8, 1, 1)          # logsigmoid(b3)
    out = jax.lax.dynamic_update_slice(
        jnp.broadcast_to(border, (N, 8, Hp, Wp)), interior, (0, 0, 1, 1))
    return out


decoder_track_c_jit = jax.jit(decoder_track_c)


def init_params(key):
    """Deterministic parameter init; shapes follow the PyTorch module."""
    k = jax.random.split(key, 10)

    def u(kk, shape, fan_in):
        bound = 1.0 / (fan_in ** 0.5)
        return jax.random.uniform(kk, shape, jnp.float32, -bound, bound)

    # CnvMod(16, 32)
    w1 = u(k[0], (32, 16, 1, 1), 16)
    b1 = u(k[1], (32,), 16)
    g1 = 1.0 + 0.1 * jax.random.normal(k[2], (32,), jnp.float32)
    be1 = 0.1 * jax.random.normal(k[3], (32,), jnp.float32)
    # DecMod(32, 16): ConvTranspose2d weight shape is (in, out, 1, 1)
    w2 = u(k[4], (32, 16, 1, 1), 32)
    b2 = u(k[5], (16,), 32)
    g2 = 1.0 + 0.1 * jax.random.normal(k[6], (16,), jnp.float32)
    be2 = 0.1 * jax.random.normal(k[7], (16,), jnp.float32)
    # Map(16, 8)
    w3 = u(k[8], (8, 16, 1, 1), 16)
    b3 = u(k[9], (8,), 16)
    return ((w1, b1, g1, be1), (w2, b2, g2, be2), (w3, b3))


def _reference_forward(x, params):
    """Pure-JAX reference mirroring the PyTorch module (training-mode BN)."""
    (w1, b1, g1, be1), (w2, b2, g2, be2), (w3, b3) = params

    def conv1x1_pad(t, w, b):
        tp = jnp.pad(t, ((0, 0), (0, 0), (1, 1), (1, 1)))
        y = jnp.einsum('oc,nchw->nohw', w.reshape(w.shape[0], w.shape[1]), tp)
        return y + b.reshape(1, -1, 1, 1)

    def bn_train(y, g, be, eps):
        mean = jnp.mean(y, axis=(0, 2, 3), keepdims=True)
        var = jnp.mean((y - mean) ** 2, axis=(0, 2, 3), keepdims=True)
        return (y - mean) * jax.lax.rsqrt(var + eps) * g.reshape(1, -1, 1, 1) \
            + be.reshape(1, -1, 1, 1)

    a1 = jax.nn.relu(bn_train(conv1x1_pad(x, w1, b1), g1, be1, 1e-3))
    # ConvTranspose2d(k=1, s=1, p=1): per-pixel matmul then crop the border.
    y2 = jnp.einsum('io,nihw->nohw', w2.reshape(32, 16), a1)[:, :, 1:-1, 1:-1] \
        + b2.reshape(1, -1, 1, 1)
    a2 = jax.nn.relu(bn_train(y2, g2, be2, 1e-5))
    return jax.nn.log_sigmoid(conv1x1_pad(a2, w3, b3))


if __name__ == "__main__":
    key = jax.random.PRNGKey(0)
    kx, kp = jax.random.split(key)
    x = jax.random.normal(kx, (2, 16, 16, 16), jnp.float32)   # NCHW, 16 input channels
    params = init_params(kp)
    wslab, pslab = pack_params(params)    # done once at parameter-load time

    # TODO(synk): BatchNorm running_mean/running_var (momentum=0.9) updates are a
    # training-only side effect and do not affect the forward output; skipped.
    out = jax.block_until_ready(decoder_track_c_jit(x, wslab, pslab))

    # (2,16,16,16) -> CnvMod (32ch, 18x18) -> DecMod (16ch, 16x16) -> Map (8ch, 18x18)
    assert out.shape == (2, 8, 18, 18), out.shape
    assert bool(jnp.all(jnp.isfinite(out)))
    assert bool(jnp.all(out <= 0.0))          # LogSigmoid is non-positive

    ref = _reference_forward(x, params)
    max_err = float(jnp.max(jnp.abs(out - ref)))
    assert max_err < 5e-2, f"mismatch vs pure-JAX reference: {max_err}"

    print("KERNEL_OK")
</pallas_src>

<mosaic_0001>
module attributes {stable_mosaic.version = 11 : i64} {
  func.func @decoder_track_c_kernel(%arg0: i32, %arg1: memref<2x16x256xf32, #tpu.memory_space<vmem>>, %arg2: memref<56x32xf32, #tpu.memory_space<vmem>>, %arg3: memref<32x8xf32, #tpu.memory_space<vmem>>, %arg4: memref<2x8x256xf32, #tpu.memory_space<vmem>>, %arg5: memref<8x128xf32, #tpu.memory_space<vmem>>) attributes {dimension_semantics = [#tpu.dimension_semantics<arbitrary>], iteration_bounds = array<i64: 1>, scalar_prefetch = 0 : i64, scratch_operands = 0 : i64, tpu.core_type = #tpu.core_type<tc>, window_params = [{pipeline_mode = #tpu.pipeline_mode<synchronous>, transform_indices = @transform_0, window_bounds = array<i64: 2, 16, 256>}, {pipeline_mode = #tpu.pipeline_mode<synchronous>, transform_indices = @transform_1, window_bounds = array<i64: 56, 32>}, {pipeline_mode = #tpu.pipeline_mode<synchronous>, transform_indices = @transform_2, window_bounds = array<i64: 32, 8>}, {pipeline_mode = #tpu.pipeline_mode<synchronous>, transform_indices = @transform_3, window_bounds = array<i64: 2, 8, 256>}, {pipeline_mode = #tpu.pipeline_mode<synchronous>, transform_indices = @transform_4, window_bounds = array<i64: 8, 128>}]} {
    %c0 = arith.constant 0 : index
    %c0_0 = arith.constant 0 : index
    %0 = vector.load %arg2[%c0, %c0_0] : memref<56x32xf32, #tpu.memory_space<vmem>>, vector<56x32xf32>
    %1 = vector.extract_strided_slice %0 {offsets = [0, 0], sizes = [32, 16], strides = [1, 1]} : vector<56x32xf32> to vector<32x16xf32>
    %2 = arith.truncf %1 : vector<32x16xf32> to vector<32x16xbf16>
    %3 = vector.extract_strided_slice %0 {offsets = [32, 0], sizes = [16, 32], strides = [1, 1]} : vector<56x32xf32> to vector<16x32xf32>
    %4 = arith.truncf %3 : vector<16x32xf32> to vector<16x32xbf16>
    %5 = vector.extract_strided_slice %0 {offsets = [48, 0], sizes = [8, 16], strides = [1, 1]} : vector<56x32xf32> to vector<8x16xf32>
    %6 = arith.truncf %5 : vector<8x16xf32> to vector<8x16xbf16>
    %c0_1 = arith.constant 0 : index
    %c0_2 = arith.constant 0 : index
    %7 = vector.load %arg3[%c0_1, %c0_2] : memref<32x8xf32, #tpu.memory_space<vmem>>, vector<32x8xf32>
    %8 = vector.extract_strided_slice %7 {offsets = [0, 0], sizes = [32, 1], strides = [1, 1]} : vector<32x8xf32> to vector<32x1xf32>
    %9 = vector.extract_strided_slice %7 {offsets = [0, 1], sizes = [32, 1], strides = [1, 1]} : vector<32x8xf32> to vector<32x1xf32>
    %10 = vector.extract_strided_slice %7 {offsets = [0, 2], sizes = [32, 1], strides = [1, 1]} : vector<32x8xf32> to vector<32x1xf32>
    %11 = vector.extract_strided_slice %7 {offsets = [0, 3], sizes = [16, 1], strides = [1, 1]} : vector<32x8xf32> to vector<16x1xf32>
    %12 = vector.extract_strided_slice %7 {offsets = [0, 4], sizes = [16, 1], strides = [1, 1]} : vector<32x8xf32> to vector<16x1xf32>
    %13 = vector.extract_strided_slice %7 {offsets = [0, 5], sizes = [16, 1], strides = [1, 1]} : vector<32x8xf32> to vector<16x1xf32>
    %14 = vector.extract_strided_slice %7 {offsets = [0, 6], sizes = [8, 1], strides = [1, 1]} : vector<32x8xf32> to vector<8x1xf32>
    %c0_3 = arith.constant 0 : index
    %c0_4 = arith.constant 0 : index
    %c0_5 = arith.constant 0 : index
    %15 = vector.load %arg1[%c0_3, %c0_4, %c0_5] : memref<2x16x256xf32, #tpu.memory_space<vmem>>, vector<1x16x256xf32>
    %16 = vector.shape_cast %15 : vector<1x16x256xf32> to vector<16x256xf32>
    %17 = arith.truncf %16 : vector<16x256xf32> to vector<16x256xbf16>
    %cst = arith.constant dense<0.000000e+00> : vector<32x256xf32>
    %18 = tpu.matmul %2, %17, %cst {dimension_numbers = #tpu.dot_dimension_numbers<[1], [0], [0], [1], [0, 0, 1, 1], [], []>} : vector<32x16xbf16>, vector<16x256xbf16>, vector<32x256xf32> -> vector<32x256xf32>
    %19 = vector.broadcast %8 : vector<32x1xf32> to vector<32x256xf32>
    %20 = arith.addf %18, %19 : vector<32x256xf32>
    %c1 = arith.constant 1 : index
    %c0_6 = arith.constant 0 : index
    %c0_7 = arith.constant 0 : index
    %21 = vector.load %arg1[%c1, %c0_6, %c0_7] : memref<2x16x256xf32, #tpu.memory_space<vmem>>, vector<1x16x256xf32>
    %22 = vector.shape_cast %21 : vector<1x16x256xf32> to vector<16x256xf32>
    %23 = arith.truncf %22 : vector<16x256xf32> to vector<16x256xbf16>
    %cst_8 = arith.constant dense<0.000000e+00> : vector<32x256xf32>
    %24 = tpu.matmul %2, %23, %cst_8 {dimension_numbers = #tpu.dot_dimension_numbers<[1], [0], [0], [1], [0, 0, 1, 1], [], []>} : vector<32x16xbf16>, vector<16x256xbf16>, vector<32x256xf32> -> vector<32x256xf32>
    %25 = vector.broadcast %8 : vector<32x1xf32> to vector<32x256xf32>
    %26 = arith.addf %24, %25 : vector<32x256xf32>
    %cst_9 = arith.constant dense<0.000000e+00> : vector<32xf32>
    %27 = vector.multi_reduction <add>, %20, %cst_9 [1] : vector<32x256xf32> to vector<32xf32>
    %28 = vector.shape_cast %27 : vector<32xf32> to vector<32x1xf32>
    %cst_10 = arith.constant 0.000000e+00 : f32
    %29 = vector.broadcast %cst_10 : f32 to vector<32x1xf32>
    %30 = arith.addf %29, %28 : vector<32x1xf32>
    %cst_11 = arith.constant dense<0.000000e+00> : vector<32xf32>
    %31 = vector.multi_reduction <add>, %26, %cst_11 [1] : vector<32x256xf32> to vector<32xf32>
    %32 = vector.shape_cast %31 : vector<32xf32> to vector<32x1xf32>
    %33 = arith.addf %30, %32 : vector<32x1xf32>
    %cst_12 = arith.constant 1.360000e+02 : f32
    %34 = vector.broadcast %cst_12 : f32 to vector<32x1xf32>
    %35 = arith.mulf %34, %8 : vector<32x1xf32>
    %36 = arith.addf %33, %35 : vector<32x1xf32>
    %cst_13 = arith.constant 0.00154320989 : f32
    %37 = vector.broadcast %cst_13 : f32 to vector<32x1xf32>
    %38 = arith.mulf %36, %37 : vector<32x1xf32>
    %39 = arith.subf %8, %38 : vector<32x1xf32>
    %40 = vector.broadcast %38 : vector<32x1xf32> to vector<32x256xf32>
    %41 = arith.subf %20, %40 : vector<32x256xf32>
    %42 = vector.broadcast %38 : vector<32x1xf32> to vector<32x256xf32>
    %43 = arith.subf %20, %42 : vector<32x256xf32>
    %44 = arith.mulf %41, %43 : vector<32x256xf32>
    %cst_14 = arith.constant dense<0.000000e+00> : vector<32xf32>
    %45 = vector.multi_reduction <add>, %44, %cst_14 [1] : vector<32x256xf32> to vector<32xf32>
    %46 = vector.shape_cast %45 : vector<32xf32> to vector<32x1xf32>
    %cst_15 = arith.constant 0.000000e+00 : f32
    %47 = vector.broadcast %cst_15 : f32 to vector<32x1xf32>
    %48 = arith.addf %47, %46 : vector<32x1xf32>
    %49 = vector.broadcast %38 : vector<32x1xf32> to vector<32x256xf32>
    %50 = arith.subf %26, %49 : vector<32x256xf32>
    %51 = vector.broadcast %38 : vector<32x1xf32> to vector<32x256xf32>
    %52 = arith.subf %26, %51 : vector<32x256xf32>
    %53 = arith.mulf %50, %52 : vector<32x256xf32>
    %cst_16 = arith.constant dense<0.000000e+00> : vector<32xf32>
    %54 = vector.multi_reduction <add>, %53, %cst_16 [1] : vector<32x256xf32> to vector<32xf32>
    %55 = vector.shape_cast %54 : vector<32xf32> to vector<32x1xf32>
    %56 = arith.addf %48, %55 : vector<32x1xf32>
    %57 = arith.mulf %39, %39 : vector<32x1xf32>
    %cst_17 = arith.constant 1.360000e+02 : f32
    %58 = vector.broadcast %cst_17 : f32 to vector<32x1xf32>
    %59 = arith.mulf %58, %57 : vector<32x1xf32>
    %60 = arith.addf %56, %59 : vector<32x1xf32>
    %cst_18 = arith.constant 0.00154320989 : f32
    %61 = vector.broadcast %cst_18 : f32 to vector<32x1xf32>
    %62 = arith.mulf %60, %61 : vector<32x1xf32>
    %cst_19 = arith.constant 1.000000e-03 : f32
    %63 = vector.broadcast %cst_19 : f32 to vector<32x1xf32>
    %64 = arith.addf %62, %63 : vector<32x1xf32>
    %65 = math.rsqrt %64 : vector<32x1xf32>
    %66 = arith.mulf %65, %9 : vector<32x1xf32>
    %67 = arith.mulf %38, %66 : vector<32x1xf32>
    %68 = arith.subf %10, %67 : vector<32x1xf32>
    %69 = vector.broadcast %66 : vector<32x1xf32> to vector<32x256xf32>
    %70 = arith.mulf %20, %69 : vector<32x256xf32>
    %71 = vector.broadcast %68 : vector<32x1xf32> to vector<32x256xf32>
    %72 = arith.addf %70, %71 : vector<32x256xf32>
    %cst_20 = arith.constant 0.000000e+00 : f32
    %73 = vector.broadcast %cst_20 : f32 to vector<32x256xf32>
    %74 = arith.maximumf %72, %73 : vector<32x256xf32>
    %75 = vector.broadcast %66 : vector<32x1xf32> to vector<32x256xf32>
    %76 = arith.mulf %26, %75 : vector<32x256xf32>
    %77 = vector.broadcast %68 : vector<32x1xf32> to vector<32x256xf32>
    %78 = arith.addf %76, %77 : vector<32x256xf32>
    %cst_21 = arith.constant 0.000000e+00 : f32
    %79 = vector.broadcast %cst_21 : f32 to vector<32x256xf32>
    %80 = arith.maximumf %78, %79 : vector<32x256xf32>
    %81 = arith.truncf %74 : vector<32x256xf32> to vector<32x256xbf16>
    %cst_22 = arith.constant dense<0.000000e+00> : vector<16x256xf32>
    %82 = tpu.matmul %4, %81, %cst_22 {dimension_numbers = #tpu.dot_dimension_numbers<[1], [0], [0], [1], [0, 0, 1, 1], [], []>} : vector<16x32xbf16>, vector<32x256xbf16>, vector<16x256xf32> -> vector<16x256xf32>
    %83 = vector.broadcast %11 : vector<16x1xf32> to vector<16x256xf32>
    %84 = arith.addf %82, %83 : vector<16x256xf32>
    %85 = arith.truncf %80 : vector<32x256xf32> to vector<32x256xbf16>
    %cst_23 = arith.constant dense<0.000000e+00> : vector<16x256xf32>
    %86 = tpu.matmul %4, %85, %cst_23 {dimension_numbers = #tpu.dot_dimension_numbers<[1], [0], [0], [1], [0, 0, 1, 1], [], []>} : vector<16x32xbf16>, vector<32x256xbf16>, vector<16x256xf32> -> vector<16x256xf32>
    %87 = vector.broadcast %11 : vector<16x1xf32> to vector<16x256xf32>
    %88 = arith.addf %86, %87 : vector<16x256xf32>
    %cst_24 = arith.constant dense<0.000000e+00> : vector<16xf32>
    %89 = vector.multi_reduction <add>, %84, %cst_24 [1] : vector<16x256xf32> to vector<16xf32>
    %90 = vector.shape_cast %89 : vector<16xf32> to vector<16x1xf32>
    %cst_25 = arith.constant 0.000000e+00 : f32
    %91 = vector.broadcast %cst_25 : f32 to vector<16x1xf32>
    %92 = arith.addf %91, %90 : vector<16x1xf32>
    %cst_26 = arith.constant dense<0.000000e+00> : vector<16xf32>
    %93 = vector.multi_reduction <add>, %88, %cst_26 [1] : vector<16x256xf32> to vector<16xf32>
    %94 = vector.shape_cast %93 : vector<16xf32> to vector<16x1xf32>
    %95 = arith.addf %92, %94 : vector<16x1xf32>
    %cst_27 = arith.constant 0.001953125 : f32
    %96 = vector.broadcast %cst_27 : f32 to vector<16x1xf32>
    %97 = arith.mulf %95, %96 : vector<16x1xf32>
    %98 = vector.broadcast %97 : vector<16x1xf32> to vector<16x256xf32>
    %99 = arith.subf %84, %98 : vector<16x256xf32>
    %100 = vector.broadcast %97 : vector<16x1xf32> to vector<16x256xf32>
    %101 = arith.subf %84, %100 : vector<16x256xf32>
    %102 = arith.mulf %99, %101 : vector<16x256xf32>
    %cst_28 = arith.constant dense<0.000000e+00> : vector<16xf32>
    %103 = vector.multi_reduction <add>, %102, %cst_28 [1] : vector<16x256xf32> to vector<16xf32>
    %104 = vector.shape_cast %103 : vector<16xf32> to vector<16x1xf32>
    %cst_29 = arith.constant 0.000000e+00 : f32
    %105 = vector.broadcast %cst_29 : f32 to vector<16x1xf32>
    %106 = arith.addf %105, %104 : vector<16x1xf32>
    %107 = vector.broadcast %97 : vector<16x1xf32> to vector<16x256xf32>
    %108 = arith.subf %88, %107 : vector<16x256xf32>
    %109 = vector.broadcast %97 : vector<16x1xf32> to vector<16x256xf32>
    %110 = arith.subf %88, %109 : vector<16x256xf32>
    %111 = arith.mulf %108, %110 : vector<16x256xf32>
    %cst_30 = arith.constant dense<0.000000e+00> : vector<16xf32>
    %112 = vector.multi_reduction <add>, %111, %cst_30 [1] : vector<16x256xf32> to vector<16xf32>
    %113 = vector.shape_cast %112 : vector<16xf32> to vector<16x1xf32>
    %114 = arith.addf %106, %113 : vector<16x1xf32>
    %cst_31 = arith.constant 0.001953125 : f32
    %115 = vector.broadcast %cst_31 : f32 to vector<16x1xf32>
    %116 = arith.mulf %114, %115 : vector<16x1xf32>
    %cst_32 = arith.constant 9.99999974E-6 : f32
    %117 = vector.broadcast %cst_32 : f32 to vector<16x1xf32>
    %118 = arith.addf %116, %117 : vector<16x1xf32>
    %119 = math.rsqrt %118 : vector<16x1xf32>
    %120 = arith.mulf %119, %12 : vector<16x1xf32>
    %121 = arith.mulf %97, %120 : vector<16x1xf32>
    %122 = arith.subf %13, %121 : vector<16x1xf32>
    %123 = vector.broadcast %120 : vector<16x1xf32> to vector<16x256xf32>
    %124 = arith.mulf %84, %123 : vector<16x256xf32>
    %125 = vector.broadcast %122 : vector<16x1xf32> to vector<16x256xf32>
    %126 = arith.addf %124, %125 : vector<16x256xf32>
    %cst_33 = arith.constant 0.000000e+00 : f32
    %127 = vector.broadcast %cst_33 : f32 to vector<16x256xf32>
    %128 = arith.maximumf %126, %127 : vector<16x256xf32>
    %129 = vector.broadcast %120 : vector<16x1xf32> to vector<16x256xf32>
    %130 = arith.mulf %88, %129 : vector<16x256xf32>
    %131 = vector.broadcast %122 : vector<16x1xf32> to vector<16x256xf32>
    %132 = arith.addf %130, %131 : vector<16x256xf32>
    %cst_34 = arith.constant 0.000000e+00 : f32
    %133 = vector.broadcast %cst_34 : f32 to vector<16x256xf32>
    %134 = arith.maximumf %132, %133 : vector<16x256xf32>
    %135 = arith.truncf %128 : vector<16x256xf32> to vector<16x256xbf16>
    %cst_35 = arith.constant dense<0.000000e+00> : vector<8x256xf32>
    %136 = tpu.matmul %6, %135, %cst_35 {dimension_numbers = #tpu.dot_dimension_numbers<[1], [0], [0], [1], [0, 0, 1, 1], [], []>} : vector<8x16xbf16>, vector<16x256xbf16>, vector<8x256xf32> -> vector<8x256xf32>
    %137 = vector.broadcast %14 : vector<8x1xf32> to vector<8x256xf32>
    %138 = arith.addf %136, %137 : vector<8x256xf32>
    %cst_36 = arith.constant 0.000000e+00 : f32
    %139 = vector.broadcast %cst_36 : f32 to vector<8x256xf32>
    %140 = arith.minimumf %138, %139 : vector<8x256xf32>
    %141 = math.absf %138 : vector<8x256xf32>
    %cst_37 = arith.constant 0.000000e+00 : f32
    %142 = vector.broadcast %cst_37 : f32 to vector<8x256xf32>
    %143 = arith.subf %142, %141 : vector<8x256xf32>
    %144 = math.exp %143 : vector<8x256xf32>
    %145 = math.log1p %144 : vector<8x256xf32>
    %146 = arith.subf %140, %145 : vector<8x256xf32>
    %c0_38 = arith.constant 0 : index
    %c0_39 = arith.constant 0 : index
    %c0_40 = arith.constant 0 : index
    %147 = vector.load %arg4[%c0_38, %c0_39, %c0_40] : memref<2x8x256xf32, #tpu.memory_space<vmem>>, vector<1x8x256xf32>
    %148 = vector.shape_cast %147 : vector<1x8x256xf32> to vector<8x256xf32>
    %149 = vector.shape_cast %146 : vector<8x256xf32> to vector<1x8x256xf32>
    tpu.vector_store %arg4[%c0_38, %c0_39, %c0_40], %149 {strides = array<i32>} : memref<2x8x256xf32, #tpu.memory_space<vmem>>, vector<1x8x256xf32>,
    %150 = arith.truncf %134 : vector<16x256xf32> to vector<16x256xbf16>
    %cst_41 = arith.constant dense<0.000000e+00> : vector<8x256xf32>
    %151 = tpu.matmul %6, %150, %cst_41 {dimension_numbers = #tpu.dot_dimension_numbers<[1], [0], [0], [1], [0, 0, 1, 1], [], []>} : vector<8x16xbf16>, vector<16x256xbf16>, vector<8x256xf32> -> vector<8x256xf32>
    %152 = vector.broadcast %14 : vector<8x1xf32> to vector<8x256xf32>
    %153 = arith.addf %151, %152 : vector<8x256xf32>
    %cst_42 = arith.constant 0.000000e+00 : f32
    %154 = vector.broadcast %cst_42 : f32 to vector<8x256xf32>
    %155 = arith.minimumf %153, %154 : vector<8x256xf32>
    %156 = math.absf %153 : vector<8x256xf32>
    %cst_43 = arith.constant 0.000000e+00 : f32
    %157 = vector.broadcast %cst_43 : f32 to vector<8x256xf32>
    %158 = arith.subf %157, %156 : vector<8x256xf32>
    %159 = math.exp %158 : vector<8x256xf32>
    %160 = math.log1p %159 : vector<8x256xf32>
    %161 = arith.subf %155, %160 : vector<8x256xf32>
    %c1_44 = arith.constant 1 : index
    %c0_45 = arith.constant 0 : index
    %c0_46 = arith.constant 0 : index
    %162 = vector.load %arg4[%c1_44, %c0_45, %c0_46] : memref<2x8x256xf32, #tpu.memory_space<vmem>>, vector<1x8x256xf32>
    %163 = vector.shape_cast %162 : vector<1x8x256xf32> to vector<8x256xf32>
    %164 = vector.shape_cast %161 : vector<8x256xf32> to vector<1x8x256xf32>
    tpu.vector_store %arg4[%c1_44, %c0_45, %c0_46], %164 {strides = array<i32>} : memref<2x8x256xf32, #tpu.memory_space<vmem>>, vector<1x8x256xf32>,
    %cst_47 = arith.constant 0.000000e+00 : f32
    %165 = vector.broadcast %cst_47 : f32 to vector<8x1xf32>
    %166 = arith.minimumf %14, %165 : vector<8x1xf32>
    %167 = math.absf %14 : vector<8x1xf32>
    %cst_48 = arith.constant 0.000000e+00 : f32
    %168 = vector.broadcast %cst_48 : f32 to vector<8x1xf32>
    %169 = arith.subf %168, %167 : vector<8x1xf32>
    %170 = math.exp %169 : vector<8x1xf32>
    %171 = math.log1p %170 : vector<8x1xf32>
    %172 = arith.subf %166, %171 : vector<8x1xf32>
    %173 = vector.shape_cast %172 : vector<8x1xf32> to vector<8x1xf32>
    %174 = vector.broadcast %173 : vector<8x1xf32> to vector<8x128xf32>
    %c0_49 = arith.constant 0 : index
    %c0_50 = arith.constant 0 : index
    %175 = vector.load %arg5[%c0_49, %c0_50] : memref<8x128xf32, #tpu.memory_space<vmem>>, vector<8x128xf32>
    tpu.vector_store %arg5[%c0_49, %c0_50], %174 {strides = array<i32>} : memref<8x128xf32, #tpu.memory_space<vmem>>, vector<8x128xf32>,
    return
  }
  func.func @transform_0(%arg0: i32) -> (i32, i32, i32) {
    %c0_i32 = arith.constant 0 : i32
    %c0_i32_0 = arith.constant 0 : i32
    %c0_i32_1 = arith.constant 0 : i32
    %c0_i32_2 = arith.constant 0 : i32
    return %c0_i32, %c0_i32_0, %c0_i32_1 : i32, i32, i32
  }
  func.func @transform_1(%arg0: i32) -> (i32, i32) {
    %c0_i32 = arith.constant 0 : i32
    %c0_i32_0 = arith.constant 0 : i32
    %c0_i32_1 = arith.constant 0 : i32
    return %c0_i32, %c0_i32_0 : i32, i32
  }
  func.func @transform_2(%arg0: i32) -> (i32, i32) {
    %c0_i32 = arith.constant 0 : i32
    %c0_i32_0 = arith.constant 0 : i32
    %c0_i32_1 = arith.constant 0 : i32
    return %c0_i32, %c0_i32_0 : i32, i32
  }
  func.func @transform_3(%arg0: i32) -> (i32, i32, i32) {
    %c0_i32 = arith.constant 0 : i32
    %c0_i32_0 = arith.constant 0 : i32
    %c0_i32_1 = arith.constant 0 : i32
    %c0_i32_2 = arith.constant 0 : i32
    return %c0_i32, %c0_i32_0, %c0_i32_1 : i32, i32, i32
  }
  func.func @transform_4(%arg0: i32) -> (i32, i32) {
    %c0_i32 = arith.constant 0 : i32
    %c0_i32_0 = arith.constant 0 : i32
    %c0_i32_1 = arith.constant 0 : i32
    return %c0_i32, %c0_i32_0 : i32, i32
  }
}

</mosaic_0001>

<bundles_post_ra>
// kernel: decoder_track_c.1
= control target key start
LH: loop header
LB: loop body
LE: loop exit
PB: predicated region body
PF: predicated region fallthrough
CT: control target
= control target key end

     0   :  { %v936_v3 = vmov 0   ;;  %vm58_vm0 = vcmask 130048   ;;  %s938_s20 = smov 2   ;;  %vm474_vm1 = vcmask 261120   ;;  %s942_s25 = smov 1   ;;  %s1256_s0 = inlined_call_operand.vmem [shape: f32[2,16,256], index: 0, kind: input, shape index: {}]   ;;  %s1257_s1 = inlined_call_operand.vmem [shape: f32[56,32], index: 1, kind: input, shape index: {}]   ;;  %s1258_s2 = inlined_call_operand.vmem [shape: f32[32,8], index: 2, kind: input, shape index: {}]   ;;  %s1259_s4 = inlined_call_operand.vmem [shape: f32[8,128], index: 4, kind: output, shape index: {1}]   ;;  %s1260_s3 = inlined_call_operand.vmem [shape: f32[2,8,256], index: 3, kind: output, shape index: {0}]  }
   0x1   :  { %v33_v0 = vld [vmem:[%s1256_s0 + $0x8] sm:$0xff]  ;;  %v35_v1 = vld [vmem:[%s1256_s0 + $0x18] sm:$0xff]  ;;  %97 = vmatprep.mubr.bf16.mxu0 %v936_v3  ;;  %157 = vmatprep.mubr.bf16.mxu1 %v936_v3  ;;  %v32_v6 = vld [vmem:[%s1256_s0] sm:$0xff] }
   0x2   :  { %v872_v2 = vld [vmem:[%s1256_s0 + $0x28] sm:$0xff]  ;;  %v37_v4 = vpack.c.bf16 %v35_v1, %v33_v0  ;;  %v874_v5 = vld [vmem:[%s1256_s0 + $0x38] sm:$0xff]  ;;  %v34_v7 = vld [vmem:[%s1256_s0 + $0x10] sm:$0xff]  ;;  %892 = vset.pattern.permute.xlu0 %v936_v3  ;;  %893 = vset.pattern.permute.xlu1 %v936_v3 }
   0x3   :  { %v124_v8 = vpack.c.bf16 %v874_v5, %v872_v2  ;;  %v36_v9 = vpack.c.bf16 %v34_v7, %v32_v6  ;;  %v871_v10 = vld [vmem:[%s1256_s0 + $0x20] sm:$0xff]  ;;  %v873_v11 = vld [vmem:[%s1256_s0 + $0x30] sm:$0xff]  ;;  %v18_v14 = vld [vmem:[%s1257_s1 + $0x8] sm:$0xff] }
   0x4   :  { %v17_v12 = vld [vmem:[%s1257_s1] sm:$0xff]  ;;  %65 = vmatprep.subr.bf16.mxu0 %v37_v4  ;;  %v123_v13 = vpack.c.bf16 %v873_v11, %v871_v10  ;;  %v1012_v17 = vld [vmem:[%s1258_s2 + $0x10] sm:$0xff]  ;;  %v1018_v18 = vld [vmem:[%s1258_s2 + $0x8] sm:$0xff] }
   0x5   :  { %125 = vmatprep.subr.bf16.mxu1 %v124_v8  ;;  %66 = vmatpush1.bf16.msra.mxu0 %v36_v9  ;;  %v24_v15 = vpack.c.bf16 %v18_v14, %v17_v12  ;;  %v1007_v16 = vld [vmem:[%s1258_s2] sm:$0xff]  ;;  %v1025_v19 = vld [vmem:[%s1258_s2 + $0x18] sm:$0xff]  ;;  %v19_v20 = vld [vmem:[%s1257_s1 + $0x10] sm:$0xff]  ;;  %v211_v10 = vmul.f32 136.0, %v1018_v18  ;;  %s937_s2 = smov 127  }
   0x6   :  { %126 = vmatpush1.bf16.msra.mxu1 %v123_v13  ;;  %40 = vperm.xlu0 %892, %v1007_v16   ;;  %v20_v21 = vld [vmem:[%s1257_s1 + $0x18] sm:$0xff]  ;;  %v210_v5 = vmul.f32 136.0, %v1007_v16 }
   0x7   :  { %50 = vperm.xlu1 %893, %v1012_v17   ;;  %v25_v22 = vpack.c.bf16 %v20_v21, %v19_v20  ;;  %v212_v20 = vmul.f32 136.0, %v1012_v17 }
   0x8   :  { %869 = vmatmul.mubr.msk.bf16.vlgmr.msra.gmra.mrb[0].mxu0 %vm58_vm0, %v24_v15 }
   0x9   :  { %875 = vmatmul.mubr.msk.bf16.vlgmr.msra.gmra.mrb[0].mxu1 %vm58_vm0, %v24_v15  ;;  %107 = vmatprep.mubr.bf16.mxu0 %v936_v3 }
   0xa   :  { %167 = vmatprep.mubr.bf16.mxu1 %v936_v3  ;;  %45 = vperm.xlu0 %892, %v1018_v18  }
   0xb   :  { %55 = vperm.xlu1 %893, %v1025_v19  }
  0x10   :  { %870 = vmatmul.mubr.msk.bf16.gmra.mrb[4].mxu0 %vm58_vm0, %v25_v22 }
  0x11   :  { %876 = vmatmul.mubr.msk.bf16.gmra.mrb[4].mxu1 %vm58_vm0, %v25_v22  ;;  %510 = vmatprep.mubr.bf16.mxu0 %v936_v3 }
  0x12   :  { %557 = vmatprep.mubr.bf16.mxu1 %v936_v3 }
  0x85   :  { %v41_v23 = vpop.permute.xlu0 %40 }
  0x86   :  { %v51_v24 = vpop.permute.xlu1 %50 }
  0x89   :  { %v46_v26 = vpop.permute.xlu0 %45 }
  0x8a   :  { %v56_v45 = vpop.permute.xlu1 %55 }
  0xdb   :  { %v99_v25 = vpop.f32.mrb[0].mxu0 }
  0xdc   :  { %v1042_v27 = vadd.f32 %v99_v25, %v41_v23  ;;  %v159_v28 = vpop.f32.mrb[0].mxu1  ;;  %v101_v29 = vpop.f32.mrb[1].mxu0 }
  0xdd   :  { %v1044_v30 = vadd.f32 %v101_v29, %v41_v23  ;;  %v161_v31 = vpop.f32.mrb[1].mxu1  ;;  %v103_v32 = vpop.f32.mrb[2].mxu0  ;;  %v1048_v36 = vadd.f32 %v159_v28, %v41_v23 }
  0xde   :  { %v1046_v33 = vadd.f32 %v103_v32, %v46_v26  ;;  %v163_v34 = vpop.f32.mrb[2].mxu1  ;;  %v105_v35 = vpop.f32.mrb[3].mxu0  ;;  %v1050_v37 = vadd.f32 %v161_v31, %v41_v23 }
  0xdf   :  { %v1052_v38 = vadd.f32 %v105_v35, %v46_v26  ;;  %v165_v39 = vpop.f32.mrb[3].mxu1  ;;  %v178_v40 = vadd.f32 %v1044_v30, %v1042_v27  ;;  %v1058_v42 = vadd.f32 %v163_v34, %v46_v26 }
  0xe0   :  { %v1060_v43 = vadd.f32 %v165_v39, %v46_v26  ;;  %v194_v46 = vadd.f32 %v1050_v37, %v1048_v36  ;;  %v213_v26 = vmul.f32 136.0, %v1025_v19 }
  0xe1   :  { %179 = vadd.xlane.f32.xlu0 %v178_v40  ;;  %v181_v41 = vadd.f32 %v1052_v38, %v1046_v33 }
  0xe2   :  { %v197_v56 = vadd.f32 %v1060_v43, %v1058_v42 }
  0xe3   :  { %v109_v44 = vpop.f32.mrb[4].mxu0  ;;  %182 = vadd.xlane.f32.xlu1 %v181_v41 }
  0xe4   :  { %v1064_v47 = vadd.f32 %v109_v44, %v51_v24  ;;  %v169_v48 = vpop.f32.mrb[4].mxu1  ;;  %v111_v49 = vpop.f32.mrb[5].mxu0 }
  0xe5   :  { %v1066_v50 = vadd.f32 %v111_v49, %v51_v24  ;;  %v171_v51 = vpop.f32.mrb[5].mxu1  ;;  %v113_v52 = vpop.f32.mrb[6].mxu0  ;;  %195 = vadd.xlane.f32.xlu0 %v194_v46  ;;  %v1068_v53 = vadd.f32 %v169_v48, %v51_v24 }
  0xe6   :  { %v173_v54 = vpop.f32.mrb[6].mxu1  ;;  %v115_v55 = vpop.f32.mrb[7].mxu0  ;;  %v1072_v57 = vadd.f32 %v171_v51, %v51_v24  ;;  %v1074_v58 = vadd.f32 %v113_v52, %v56_v45 }
  0xe7   :  { %v1076_v59 = vadd.f32 %v115_v55, %v56_v45  ;;  %v175_v60 = vpop.f32.mrb[7].mxu1  ;;  %v184_v61 = vadd.f32 %v1066_v50, %v1064_v47  ;;  %v1080_v62 = vadd.f32 %v173_v54, %v56_v45 }
  0xe8   :  { %v1082_v63 = vadd.f32 %v175_v60, %v56_v45  ;;  %v200_v0 = vadd.f32 %v1072_v57, %v1068_v53 }
  0xe9   :  { %185 = vadd.xlane.f32.xlu1 %v184_v61  ;;  %198 = vadd.xlane.f32.xlu0 %v197_v56  ;;  %v187_v1 = vadd.f32 %v1076_v59, %v1074_v58 }
  0xea   :  { %v203_v2 = vadd.f32 %v1082_v63, %v1080_v62 }
  0xed   :  { %201 = vadd.xlane.f32.xlu1 %v200_v0  ;;  %188 = vadd.xlane.f32.xlu0 %v187_v1 }
  0xf1   :  { %204 = vadd.xlane.f32.xlu0 %v203_v2 }
 0x16e   :  { %v180_v4 = vpop.xlane.xlu0 %179 }
 0x170   :  { %v183_v6 = vpop.xlane.xlu1 %182 }
 0x172   :  { %v196_v7 = vpop.xlane.xlu0 %195 }
 0x173   :  { %v206_v8 = vadd.f32 %v196_v7, %v180_v4 }
 0x175   :  { %v214_v9 = vadd.f32 %v210_v5, %v206_v8 }
 0x176   :  { %v186_v11 = vpop.xlane.xlu1 %185  ;;  %v199_v12 = vpop.xlane.xlu0 %198 }
 0x177   :  { %v1092_v13 = vmul.f32 0.0015432099, %v214_v9  ;;  %v207_v14 = vadd.f32 %v199_v12, %v183_v6 }
 0x179   :  { %v215_v15 = vadd.f32 %v211_v10, %v207_v14  ;;  %228 = vperm.xlu1 %893, %v1092_v13  }
 0x17a   :  { %v202_v21 = vpop.xlane.xlu1 %201  ;;  %v189_v22 = vpop.xlane.xlu0 %188 }
 0x17b   :  { %v1096_v23 = vmul.f32 0.0015432099, %v215_v15  ;;  %v208_v24 = vadd.f32 %v202_v21, %v186_v11 }
 0x17d   :  { %v216_v25 = vadd.f32 %v212_v20, %v208_v24  ;;  %233 = vperm.xlu0 %892, %v1096_v23  }
 0x17e   :  { %v205_v28 = vpop.xlane.xlu0 %204 }
 0x17f   :  { %v1100_v29 = vmul.f32 0.0015432099, %v216_v25  ;;  %v209_v31 = vadd.f32 %v205_v28, %v189_v22 }
 0x181   :  { %v217_v32 = vadd.f32 %v213_v26, %v209_v31  ;;  %238 = vperm.xlu1 %893, %v1100_v29  }
 0x183   :  { %v1103_v34 = vmul.f32 0.0015432099, %v217_v32 }
 0x185   :  { %243 = vperm.xlu1 %893, %v1103_v34  }
 0x189   :  { %334 = vrot.lane.b32.xlu1 %v1007_v16, %s937_s2 }
 0x1f8   :  { %v229_v35 = vpop.permute.xlu1 %228 }
 0x1f9   :  { %v246_v39 = vsub.f32 %v1042_v27, %v229_v35  ;;  %v247_v40 = vsub.f32 %v1044_v30, %v229_v35  ;;  %v278_v41 = vsub.f32 %v1048_v36, %v229_v35  ;;  %v279_v44 = vsub.f32 %v1050_v37, %v229_v35 }
 0x1fb   :  { %v254_v45 = vmul.f32 %v246_v39, %v246_v39  ;;  %v255_v46 = vmul.f32 %v247_v40, %v247_v40  ;;  %v286_v49 = vmul.f32 %v278_v41, %v278_v41  ;;  %v287_v51 = vmul.f32 %v279_v44, %v279_v44 }
 0x1fc   :  { %v234_v48 = vpop.permute.xlu0 %233 }
 0x1fd   :  { %v262_v52 = vadd.f32 %v255_v46, %v254_v45  ;;  %v248_v54 = vsub.f32 %v1046_v33, %v234_v48  ;;  %v249_v55 = vsub.f32 %v1052_v38, %v234_v48  ;;  %v280_v56 = vsub.f32 %v1058_v42, %v234_v48 }
 0x1fe   :  { %v281_v60 = vsub.f32 %v1060_v43, %v234_v48  ;;  %v294_v2 = vadd.f32 %v287_v51, %v286_v49  ;;  %v222_v45 = vsub.f32 %v1007_v16, %v1092_v13  ;;  %v223_v51 = vsub.f32 %v1018_v18, %v1096_v23 }
 0x1ff   :  { %263 = vadd.xlane.f32.xlu0 %v262_v52  ;;  %v256_v61 = vmul.f32 %v248_v54, %v248_v54  ;;  %v257_v0 = vmul.f32 %v249_v55, %v249_v55  ;;  %v288_v4 = vmul.f32 %v280_v56, %v280_v56  ;;  %v224_v55 = vsub.f32 %v1012_v17, %v1100_v29 }
 0x200   :  { %v239_v1 = vpop.permute.xlu1 %238  ;;  %v289_v5 = vmul.f32 %v281_v60, %v281_v60  ;;  %v310_v49 = vmul.f32 %v222_v45, %v222_v45 }
 0x201   :  { %v265_v6 = vadd.f32 %v257_v0, %v256_v61  ;;  %v250_v7 = vsub.f32 %v1064_v47, %v239_v1  ;;  %v251_v8 = vsub.f32 %v1066_v50, %v239_v1  ;;  %v282_v9 = vsub.f32 %v1068_v53, %v239_v1 }
 0x202   :  { %v283_v10 = vsub.f32 %v1072_v57, %v239_v1  ;;  %v297_v15 = vadd.f32 %v289_v5, %v288_v4  ;;  %v314_v56 = vmul.f32 136.0, %v310_v49  ;;  %v311_v61 = vmul.f32 %v223_v51, %v223_v51 }
 0x203   :  { %295 = vadd.xlane.f32.xlu0 %v294_v2  ;;  %266 = vadd.xlane.f32.xlu1 %v265_v6  ;;  %v258_v11 = vmul.f32 %v250_v7, %v250_v7  ;;  %v259_v12 = vmul.f32 %v251_v8, %v251_v8  ;;  %v290_v20 = vmul.f32 %v282_v9, %v282_v9 }
 0x204   :  { %v244_v14 = vpop.permute.xlu1 %243  ;;  %v291_v21 = vmul.f32 %v283_v10, %v283_v10  ;;  %v312_v4 = vmul.f32 %v224_v55, %v224_v55  ;;  %v315_v6 = vmul.f32 136.0, %v311_v61  ;;  %v225_v8 = vsub.f32 %v1025_v19, %v1103_v34 }
 0x205   :  { %v268_v22 = vadd.f32 %v259_v12, %v258_v11  ;;  %v252_v24 = vsub.f32 %v1074_v58, %v244_v14  ;;  %v253_v25 = vsub.f32 %v1076_v59, %v244_v14  ;;  %v284_v26 = vsub.f32 %v1080_v62, %v244_v14 }
 0x206   :  { %v285_v28 = vsub.f32 %v1082_v63, %v244_v14  ;;  %v300_v39 = vadd.f32 %v291_v21, %v290_v20  ;;  %v316_v11 = vmul.f32 136.0, %v312_v4  ;;  %v313_v21 = vmul.f32 %v225_v8, %v225_v8 }
 0x207   :  { %298 = vadd.xlane.f32.xlu0 %v297_v15  ;;  %269 = vadd.xlane.f32.xlu1 %v268_v22  ;;  %v260_v31 = vmul.f32 %v252_v24, %v252_v24  ;;  %v261_v32 = vmul.f32 %v253_v25, %v253_v25  ;;  %v292_v40 = vmul.f32 %v284_v26, %v284_v26  ;;  %v940_v8 = vmov 3  }
 0x208   :  { %v293_v41 = vmul.f32 %v285_v28, %v285_v28  ;;  %v335_v46 = vpop.permute.xlu1 %334  ;;  %v317_v28 = vmul.f32 136.0, %v313_v21 }
 0x209   :  { %v271_v35 = vadd.f32 %v261_v32, %v260_v31 }
 0x20a   :  { %v303_v44 = vadd.f32 %v293_v41, %v292_v40 }
 0x20b   :  { %272 = vadd.xlane.f32.xlu0 %v271_v35  ;;  %301 = vadd.xlane.f32.xlu1 %v300_v39 }
 0x20f   :  { %304 = vadd.xlane.f32.xlu0 %v303_v44 }
 0x21c   :  { %338 = vrot.lane.b32.xlu1 %v1012_v17, %s937_s2 }
 0x220   :  { %340 = vrot.lane.b32.xlu1 %v1025_v19, %s937_s2 }
 0x225   :  { %336 = vrot.lane.b32.xlu0 %v1018_v18, %s937_s2 }
 0x28c   :  { %v264_v48 = vpop.xlane.xlu0 %263 }
 0x290   :  { %v267_v52 = vpop.xlane.xlu1 %266  ;;  %v296_v54 = vpop.xlane.xlu0 %295 }
 0x291   :  { %v306_v60 = vadd.f32 %v296_v54, %v264_v48 }
 0x293   :  { %v318_v0 = vadd.f32 %v314_v56, %v306_v60 }
 0x294   :  { %v270_v1 = vpop.xlane.xlu1 %269  ;;  %v299_v2 = vpop.xlane.xlu0 %298 }
 0x295   :  { %v322_v5 = vmul.f32 0.0015432099, %v318_v0  ;;  %v307_v7 = vadd.f32 %v299_v2, %v267_v52 }
 0x297   :  { %v326_v9 = vadd.f32 0.001, %v322_v5  ;;  %v319_v10 = vadd.f32 %v315_v6, %v307_v7 }
 0x298   :  { %v302_v12 = vpop.xlane.xlu1 %301  ;;  %v273_v14 = vpop.xlane.xlu0 %272 }
 0x299   :  { %904 = vrsqrt.f32 %v326_v9  ;;  %v323_v15 = vmul.f32 0.0015432099, %v319_v10  ;;  %v308_v20 = vadd.f32 %v302_v12, %v270_v1 }
 0x29b   :  { %v327_v22 = vadd.f32 0.001, %v323_v15  ;;  %v320_v24 = vadd.f32 %v316_v11, %v308_v20 }
 0x29c   :  { %v305_v25 = vpop.xlane.xlu0 %304  ;;  %v339_v51 = vpop.permute.xlu1 %338 }
 0x29d   :  { %906 = vrsqrt.f32 %v327_v22  ;;  %v324_v26 = vmul.f32 0.0015432099, %v320_v24  ;;  %v309_v31 = vadd.f32 %v305_v25, %v273_v14 }
 0x29f   :  { %v328_v32 = vadd.f32 0.001, %v324_v26  ;;  %v321_v35 = vadd.f32 %v317_v28, %v309_v31 }
 0x2a0   :  { %v337_v45 = vpop.permute.xlu0 %336  ;;  %v341_v60 = vpop.permute.xlu1 %340 }
 0x2a1   :  { %908 = vrsqrt.f32 %v328_v32  ;;  %v325_v39 = vmul.f32 0.0015432099, %v321_v35 }
 0x2a3   :  { %v905_v40 = vpop.eup %904  ;;  %v329_v41 = vadd.f32 0.001, %v325_v39 }
 0x2a4   :  { %v346_v44 = vmul.f32 %v905_v40, %v335_v46 }
 0x2a5   :  { %910 = vrsqrt.f32 %v329_v41 }
 0x2a6   :  { %v350_v48 = vmul.f32 %v346_v44, %v1092_v13  ;;  %v939_v13 = vmov 2  }
 0x2a7   :  { %v907_v49 = vpop.eup %906 }
 0x2a8   :  { %v347_v52 = vmul.f32 %v907_v49, %v337_v45  ;;  %358 = vrot.lane.b32.xlu0 %v350_v48, %s938_s20 }
 0x2aa   :  { %v351_v54 = vmul.f32 %v347_v52, %v1096_v23 }
 0x2ab   :  { %v909_v55 = vpop.eup %908 }
 0x2ac   :  { %v348_v56 = vmul.f32 %v909_v55, %v339_v51  ;;  %360 = vrot.lane.b32.xlu1 %v351_v54, %s938_s20 }
 0x2ae   :  { %v352_v61 = vmul.f32 %v348_v56, %v1100_v29 }
 0x2af   :  { %v911_v0 = vpop.eup %910 }
 0x2b0   :  { %v349_v1 = vmul.f32 %v911_v0, %v341_v60  ;;  %362 = vrot.lane.b32.xlu0 %v352_v61, %s938_s20 }
 0x2b2   :  { %v353_v46 = vmul.f32 %v349_v1, %v1103_v34 }
 0x2b4   :  { %376 = vperm.xlu0 %892, %v346_v44   ;;  %364 = vrot.lane.b32.xlu1 %v353_v46, %s938_s20 }
 0x2b8   :  { %381 = vperm.xlu1 %893, %v347_v52   ;;  %894 = vset.pattern.permute.xlu0 %v939_v13 }
 0x2bc   :  { %386 = vperm.xlu1 %893, %v348_v56  }
 0x2c0   :  { %896 = vset.pattern.permute.xlu1 %v939_v13 }
 0x31a   :  { %v359_v2 = vpop.permute.xlu0 %358 }
 0x31b   :  { %v370_v23 = vsub.f32 %v1007_v16, %v359_v2 }
 0x31d   :  { %404 = vperm.xlu0 %894, %v370_v23  }
 0x31e   :  { %v361_v4 = vpop.permute.xlu1 %360 }
 0x31f   :  { %v371_v5 = vsub.f32 %v1018_v18, %v361_v4 }
 0x321   :  { %409 = vperm.xlu1 %896, %v371_v5   ;;  %895 = vset.pattern.permute.xlu0 %v936_v3 }
 0x322   :  { %391 = vperm.xlu0 %895, %v349_v1   ;;  %v363_v29 = vpop.permute.xlu0 %362 }
 0x323   :  { %v372_v34 = vsub.f32 %v1012_v17, %v363_v29 }
 0x325   :  { %414 = vperm.xlu1 %896, %v372_v34  }
 0x326   :  { %v365_v6 = vpop.permute.xlu1 %364  ;;  %897 = vset.pattern.permute.xlu0 %v940_v8 }
 0x327   :  { %v373_v7 = vsub.f32 %v1025_v19, %v365_v6  ;;  %467 = vperm.xlu0 %897, %v1007_v16  }
 0x329   :  { %419 = vperm.xlu1 %896, %v373_v7  }
 0x32d   :  { %898 = vset.pattern.permute.xlu1 %v940_v8 }
 0x32e   :  { %471 = vperm.xlu1 %898, %v1018_v18  }
 0x333   :  { %v377_v10 = vpop.permute.xlu0 %376 }
 0x334   :  { %v394_v14 = vmul.f32 %v377_v10, %v1042_v27  ;;  %v395_v17 = vmul.f32 %v377_v10, %v1044_v30  ;;  %v438_v15 = vmul.f32 %v377_v10, %v1048_v36  ;;  %v439_v19 = vmul.f32 %v377_v10, %v1050_v37 }
 0x337   :  { %v382_v9 = vpop.permute.xlu1 %381 }
 0x338   :  { %v396_v20 = vmul.f32 %v382_v9, %v1046_v33  ;;  %v397_v21 = vmul.f32 %v382_v9, %v1052_v38  ;;  %v440_v22 = vmul.f32 %v382_v9, %v1058_v42  ;;  %v441_v24 = vmul.f32 %v382_v9, %v1060_v43 }
 0x33b   :  { %v387_v11 = vpop.permute.xlu1 %386 }
 0x33c   :  { %v398_v36 = vmul.f32 %v387_v11, %v1064_v47  ;;  %v399_v37 = vmul.f32 %v387_v11, %v1066_v50  ;;  %v442_v33 = vmul.f32 %v387_v11, %v1068_v53  ;;  %v443_v38 = vmul.f32 %v387_v11, %v1072_v57 }
 0x39c   :  { %v405_v12 = vpop.permute.xlu0 %404 }
 0x39d   :  { %v422_v25 = vadd.f32 %v405_v12, %v394_v14  ;;  %v423_v26 = vadd.f32 %v405_v12, %v395_v17  ;;  %v446_v28 = vadd.f32 %v438_v15, %v405_v12  ;;  %v447_v31 = vadd.f32 %v439_v19, %v405_v12 }
 0x39f   :  { %v430_v44 = vmax.f32 %v422_v25, 0.0  ;;  %v454_v45 = vmax.f32 %v446_v28, 0.0  ;;  %v431_v51 = vmax.f32 %v423_v26, 0.0  ;;  %v455_v52 = vmax.f32 %v447_v31, 0.0 }
 0x3a0   :  { %v410_v32 = vpop.permute.xlu1 %409 }
 0x3a1   :  { %v424_v27 = vadd.f32 %v410_v32, %v396_v20  ;;  %v425_v35 = vadd.f32 %v410_v32, %v397_v21  ;;  %v448_v30 = vadd.f32 %v440_v22, %v410_v32  ;;  %v449_v39 = vadd.f32 %v441_v24, %v410_v32  ;;  %v392_v48 = vpop.permute.xlu0 %391 }
 0x3a2   :  { %v400_v57 = vmul.f32 %v392_v48, %v1074_v58  ;;  %v401_v0 = vmul.f32 %v392_v48, %v1076_v59  ;;  %v444_v1 = vmul.f32 %v392_v48, %v1080_v62  ;;  %v445_v46 = vmul.f32 %v392_v48, %v1082_v63  ;;  %v21_v62 = vld [vmem:[%s1257_s1 + $0x20] sm:$0xff]  ;;  %v22_v63 = vld [vmem:[%s1257_s1 + $0x28] sm:$0xff] }
 0x3a3   :  { %v432_v42 = vmax.f32 %v424_v27, 0.0  ;;  %v456_v40 = vmax.f32 %v448_v30, 0.0  ;;  %v433_v43 = vmax.f32 %v425_v35, 0.0  ;;  %v457_v41 = vmax.f32 %v449_v39, 0.0 }
 0x3a4   :  { %v415_v49 = vpop.permute.xlu1 %414  ;;  %v26_v17 = vpack.c.bf16 %v22_v63, %v21_v62 }
 0x3a5   :  { %v426_v54 = vadd.f32 %v415_v49, %v398_v36  ;;  %v427_v55 = vadd.f32 %v415_v49, %v399_v37  ;;  %v450_v56 = vadd.f32 %v442_v33, %v415_v49  ;;  %v451_v47 = vadd.f32 %v443_v38, %v415_v49 }
 0x3a6   :  { %v463_v60 = vpack.c.bf16 %v433_v43, %v431_v51  ;;  %v522_v50 = vpack.c.bf16 %v457_v41, %v455_v52  ;;  %v462_v61 = vpack.c.bf16 %v432_v42, %v430_v44  ;;  %v521_v53 = vpack.c.bf16 %v456_v40, %v454_v45  ;;  %v468_v15 = vpop.permute.xlu0 %467 }
 0x3a7   :  { %v434_v29 = vmax.f32 %v426_v54, 0.0  ;;  %v458_v34 = vmax.f32 %v450_v56, 0.0  ;;  %v435_v6 = vmax.f32 %v427_v55, 0.0  ;;  %v459_v7 = vmax.f32 %v451_v47, 0.0 }
 0x3a8   :  { %478 = vmatprep.subr.bf16.mxu0 %v463_v60  ;;  %525 = vmatprep.subr.bf16.mxu1 %v522_v50  ;;  %v420_v13 = vpop.permute.xlu1 %419 }
 0x3a9   :  { %v428_v2 = vadd.f32 %v420_v13, %v400_v57  ;;  %v429_v23 = vadd.f32 %v420_v13, %v401_v0  ;;  %v452_v4 = vadd.f32 %v444_v1, %v420_v13  ;;  %v453_v5 = vadd.f32 %v445_v46, %v420_v13  ;;  %479 = vmatpush1.bf16.msra.mxu0 %v462_v61 }
 0x3aa   :  { %526 = vmatpush1.bf16.msra.mxu1 %v521_v53 }
 0x3ab   :  { %v436_v58 = vmax.f32 %v428_v2, 0.0  ;;  %v460_v8 = vmax.f32 %v452_v4, 0.0  ;;  %v437_v59 = vmax.f32 %v429_v23, 0.0  ;;  %v461_v9 = vmax.f32 %v453_v5, 0.0 }
 0x3ad   :  { %v465_v10 = vpack.c.bf16 %v437_v59, %v435_v6  ;;  %v524_v11 = vpack.c.bf16 %v461_v9, %v459_v7  ;;  %v464_v12 = vpack.c.bf16 %v436_v58, %v434_v29  ;;  %v523_v14 = vpack.c.bf16 %v460_v8, %v458_v34  ;;  %v472_v19 = vpop.permute.xlu1 %471 }
 0x3ae   :  { %v941_v7 = vmov 4  }
 0x3af   :  { %480 = vmatprep.subr.bf16.mxu0 %v465_v10  ;;  %527 = vmatprep.subr.bf16.mxu1 %v524_v11 }
 0x3b0   :  { %481 = vmatpush1.bf16.msra.mxu0 %v464_v12  ;;  %528 = vmatpush1.bf16.msra.mxu1 %v523_v14 }
 0x3b1   :  { %899 = vset.pattern.permute.xlu1 %v941_v7  ;;  %900 = vset.pattern.permute.xlu0 %v941_v7 }
 0x3b3   :  { %877 = vmatmul.mubr.msk.bf16.vlgmr.msra.gmra.mrb[8].mxu0 %vm474_vm1, %v26_v17  ;;  %878 = vmatmul.mubr.msk.bf16.vlgmr.msra.gmra.mrb[8].mxu1 %vm474_vm1, %v26_v17 }
 0x3b4   :  { %723 = vmatprep.mubr.bf16.mxu0 %v936_v3  ;;  %798 = vmatprep.mubr.bf16.mxu1 %v936_v3 }
 0x486   :  { %v512_v20 = vpop.f32.mrb[8].mxu0  ;;  %v559_v21 = vpop.f32.mrb[8].mxu1 }
 0x487   :  { %v1173_v22 = vadd.f32 %v512_v20, %v468_v15  ;;  %v514_v24 = vpop.f32.mrb[9].mxu0  ;;  %v561_v25 = vpop.f32.mrb[9].mxu1  ;;  %v1177_v32 = vadd.f32 %v559_v21, %v468_v15 }
 0x488   :  { %v1175_v26 = vadd.f32 %v514_v24, %v468_v15  ;;  %v516_v28 = vpop.f32.mrb[10].mxu0  ;;  %v563_v31 = vpop.f32.mrb[10].mxu1  ;;  %v1179_v27 = vadd.f32 %v561_v25, %v468_v15  ;;  %v943_v25 = vmov 5  }
 0x489   :  { %v1181_v35 = vadd.f32 %v516_v28, %v472_v19  ;;  %v518_v30 = vpop.f32.mrb[11].mxu0  ;;  %v565_v3 = vpop.f32.mrb[11].mxu1  ;;  %v1183_v39 = vadd.f32 %v563_v31, %v472_v19 }
 0x48a   :  { %v1185_v36 = vadd.f32 %v518_v30, %v472_v19  ;;  %v1187_v37 = vadd.f32 %v565_v3, %v472_v19  ;;  %v568_v33 = vadd.f32 %v1175_v26, %v1173_v22  ;;  %v576_v40 = vadd.f32 %v1179_v27, %v1177_v32 }
 0x48c   :  { %569 = vadd.xlane.f32.xlu1 %v568_v33  ;;  %v571_v38 = vadd.f32 %v1185_v36, %v1181_v35  ;;  %v579_v42 = vadd.f32 %v1187_v37, %v1183_v39  ;;  %v841_v33 = vand.u32 2147483647, %v1007_v16 }
 0x48e   :  { %572 = vadd.xlane.f32.xlu0 %v571_v38  ;;  %v944_v38 = vmov 6  }
 0x490   :  { %580 = vadd.xlane.f32.xlu1 %v579_v42  ;;  %v842_v42 = vsub.f32 0.0, %v841_v33 }
 0x492   :  { %577 = vadd.xlane.f32.xlu0 %v576_v40  ;;  %v843_v40 = vmul.f32 1.442695, %v842_v42 }
 0x519   :  { %v570_v43 = vpop.xlane.xlu1 %569 }
 0x51b   :  { %v573_v41 = vpop.xlane.xlu0 %572 }
 0x51d   :  { %v581_v44 = vpop.xlane.xlu1 %580 }
 0x51e   :  { %v583_v45 = vadd.f32 %v581_v44, %v573_v41 }
 0x51f   :  { %v578_v48 = vpop.xlane.xlu0 %577 }
 0x520   :  { %v585_v49 = vmul.f32 0.001953125, %v583_v45  ;;  %v582_v51 = vadd.f32 %v578_v48, %v570_v43 }
 0x522   :  { %v584_v52 = vmul.f32 0.001953125, %v582_v51  ;;  %v588_v54 = vsub.f32 %v1181_v35, %v585_v49  ;;  %v589_v55 = vsub.f32 %v1185_v36, %v585_v49  ;;  %v604_v56 = vsub.f32 %v1183_v39, %v585_v49 }
 0x523   :  { %v605_v47 = vsub.f32 %v1187_v37, %v585_v49 }
 0x524   :  { %v592_v60 = vmul.f32 %v588_v54, %v588_v54  ;;  %v593_v50 = vmul.f32 %v589_v55, %v589_v55  ;;  %v586_v61 = vsub.f32 %v1173_v22, %v584_v52  ;;  %v587_v53 = vsub.f32 %v1175_v26, %v584_v52 }
 0x525   :  { %v608_v57 = vmul.f32 %v604_v56, %v604_v56  ;;  %v602_v0 = vsub.f32 %v1177_v32, %v584_v52  ;;  %v603_v1 = vsub.f32 %v1179_v27, %v584_v52  ;;  %v609_v23 = vmul.f32 %v605_v47, %v605_v47 }
 0x526   :  { %v597_v46 = vadd.f32 %v593_v50, %v592_v60  ;;  %v590_v13 = vmul.f32 %v586_v61, %v586_v61  ;;  %v591_v2 = vmul.f32 %v587_v53, %v587_v53 }
 0x527   :  { %v606_v5 = vmul.f32 %v602_v0, %v602_v0  ;;  %v607_v29 = vmul.f32 %v603_v1, %v603_v1  ;;  %v613_v34 = vadd.f32 %v609_v23, %v608_v57 }
 0x528   :  { %598 = vadd.xlane.f32.xlu1 %v597_v46  ;;  %v594_v4 = vadd.f32 %v591_v2, %v590_v13 }
 0x529   :  { %v610_v6 = vadd.f32 %v607_v29, %v606_v5 }
 0x52a   :  { %595 = vadd.xlane.f32.xlu0 %v594_v4 }
 0x52c   :  { %614 = vadd.xlane.f32.xlu1 %v613_v34 }
 0x52e   :  { %611 = vadd.xlane.f32.xlu0 %v610_v6 }
 0x5b5   :  { %v599_v58 = vpop.xlane.xlu1 %598 }
 0x5b7   :  { %v596_v8 = vpop.xlane.xlu0 %595 }
 0x5b9   :  { %v615_v59 = vpop.xlane.xlu1 %614 }
 0x5ba   :  { %v617_v9 = vadd.f32 %v615_v59, %v599_v58 }
 0x5bb   :  { %v612_v62 = vpop.xlane.xlu0 %611 }
 0x5bc   :  { %v619_v63 = vmul.f32 0.001953125, %v617_v9  ;;  %v616_v10 = vadd.f32 %v612_v62, %v596_v8 }
 0x5be   :  { %v621_v11 = vadd.f32 1e-05, %v619_v63  ;;  %v618_v12 = vmul.f32 0.001953125, %v616_v10 }
 0x5c0   :  { %912 = vrsqrt.f32 %v621_v11  ;;  %v620_v14 = vadd.f32 1e-05, %v618_v12 }
 0x5c2   :  { %914 = vrsqrt.f32 %v620_v14 }
 0x5c3   :  { %916 = vpow2.f32 %v843_v40 }
 0x5ca   :  { %v913_v17 = vpop.eup %912 }
 0x5cb   :  { %v625_v15 = vmul.f32 %v913_v17, %v1018_v18 }
 0x5cc   :  { %v915_v19 = vpop.eup %914 }
 0x5cd   :  { %v627_v20 = vmul.f32 %v625_v15, %v585_v49  ;;  %v624_v21 = vmul.f32 %v915_v19, %v1007_v16  ;;  %v917_v43 = vpop.eup %916 }
 0x5ce   :  { %v845_v41 = vadd.f32 1.0, %v917_v43  ;;  %v848_v44 = vmul.f32 -0.5, %v917_v43  ;;  %v851_v48 = vand.u32 2147483647, %v917_v43 }
 0x5cf   :  { %632 = vrot.lane.b32.xlu1 %v627_v20, %s942_s25  ;;  %v626_v24 = vmul.f32 %v624_v21, %v584_v52 }
 0x5d0   :  { %918 = vlog2.f32 %v845_v41  ;;  %v849_v45 = vadd.f32 1.0, %v848_v44  ;;  %vm852_vm2 = vcmp.lt.f32.partialorder %v851_v48, 0.0004427343 }
 0x5d1   :  { %630 = vrot.lane.b32.xlu0 %v626_v24, %s942_s25 }
 0x5d2   :  { %v850_v49 = vmul.f32 %v917_v43, %v849_v45 }
 0x5d3   :  { %640 = vperm.xlu1 %899, %v624_v21  }
 0x5d5   :  { %645 = vperm.xlu0 %900, %v625_v15  }
 0x5d7   :  { %901 = vset.pattern.permute.xlu1 %v943_v25 }
 0x5d9   :  { %902 = vset.pattern.permute.xlu0 %v944_v38 }
 0x5da   :  { %685 = vperm.xlu0 %902, %v1007_v16   ;;  %v919_v51 = vpop.eup %918 }
 0x5db   :  { %v847_v52 = vmul.f32 0.6931472, %v919_v51 }
 0x5dd   :  { %v853_v54 = vsel %vm852_vm2, %v850_v49, %v847_v52 }
 0x641   :  { %v633_v30 = vpop.permute.xlu1 %632 }
 0x642   :  { %v637_v3 = vsub.f32 %v1018_v18, %v633_v30  ;;  %v840_v18 = vmin.f32 %v1007_v16, 0.0 }
 0x643   :  { %v631_v28 = vpop.permute.xlu0 %630 }
 0x644   :  { %v636_v31 = vsub.f32 %v1007_v16, %v631_v28  ;;  %v854_v55 = vsub.f32 %v840_v18, %v853_v54 }
 0x646   :  { %654 = vperm.xlu1 %901, %v636_v31  }
 0x64a   :  { %659 = vperm.xlu1 %901, %v637_v3  }
 0x64e   :  { %903 = vset.pattern.permute.xlu1 %v944_v38 }
 0x64f   :  { %857 = vperm.xlu1 %903, %v854_v55  }
 0x652   :  { %v641_v56 = vpop.permute.xlu1 %640 }
 0x653   :  { %v648_v47 = vmul.f32 %v641_v56, %v1173_v22  ;;  %v649_v60 = vmul.f32 %v641_v56, %v1175_v26  ;;  %v670_v50 = vmul.f32 %v641_v56, %v1177_v32  ;;  %v671_v61 = vmul.f32 %v641_v56, %v1179_v27 }
 0x654   :  { %v646_v53 = vpop.permute.xlu0 %645 }
 0x655   :  { %v650_v13 = vmul.f32 %v646_v53, %v1181_v35  ;;  %v651_v2 = vmul.f32 %v646_v53, %v1185_v36  ;;  %v672_v23 = vmul.f32 %v646_v53, %v1183_v39  ;;  %v673_v22 = vmul.f32 %v646_v53, %v1187_v37  ;;  %v23_v35 = vld [vmem:[%s1257_s1 + $0x30] sm:$0xff] }
 0x656   :  { %v27_v63 = vpack.c.bf16 %v23_v35, %v23_v35 }
 0x659   :  { %v686_v11 = vpop.permute.xlu0 %685 }
 0x6c5   :  { %v655_v57 = vpop.permute.xlu1 %654 }
 0x6c6   :  { %v662_v0 = vadd.f32 %v655_v57, %v648_v47  ;;  %v663_v1 = vadd.f32 %v655_v57, %v649_v60  ;;  %v674_v46 = vadd.f32 %v670_v50, %v655_v57  ;;  %v675_v16 = vadd.f32 %v671_v61, %v655_v57 }
 0x6c8   :  { %v666_v27 = vmax.f32 %v662_v0, 0.0  ;;  %v678_v34 = vmax.f32 %v674_v46, 0.0  ;;  %v667_v6 = vmax.f32 %v663_v1, 0.0  ;;  %v679_v7 = vmax.f32 %v675_v16, 0.0 }
 0x6c9   :  { %v660_v4 = vpop.permute.xlu1 %659 }
 0x6ca   :  { %v664_v26 = vadd.f32 %v660_v4, %v650_v13  ;;  %v665_v5 = vadd.f32 %v660_v4, %v651_v2  ;;  %v676_v32 = vadd.f32 %v672_v23, %v660_v4  ;;  %v677_v29 = vadd.f32 %v673_v22, %v660_v4 }
 0x6cc   :  { %v668_v58 = vmax.f32 %v664_v26, 0.0  ;;  %v680_v8 = vmax.f32 %v676_v32, 0.0  ;;  %v669_v59 = vmax.f32 %v665_v5, 0.0  ;;  %v681_v9 = vmax.f32 %v677_v29, 0.0 }
 0x6ce   :  { %v683_v39 = vpack.c.bf16 %v669_v59, %v667_v6  ;;  %v765_v36 = vpack.c.bf16 %v681_v9, %v679_v7  ;;  %v682_v37 = vpack.c.bf16 %v668_v58, %v666_v27  ;;  %v764_v62 = vpack.c.bf16 %v680_v8, %v678_v34  ;;  %v858_v10 = vpop.permute.xlu1 %857 }
 0x6cf   :  { %860 = vst [vmem:[%s1259_s4] sm:$0xff] %v858_v10 }
 0x6d0   :  { %691 = vmatprep.subr.bf16.mxu0 %v683_v39  ;;  %766 = vmatprep.subr.bf16.mxu1 %v765_v36 }
 0x6d1   :  { %692 = vmatpush1.bf16.msra.mxu0 %v682_v37  ;;  %767 = vmatpush1.bf16.msra.mxu1 %v764_v62 }
 0x6d4   :  { %879 = vmatmul.mubr.msk.bf16.vlgmr.msra.gmra.mrb[12].mxu0 %vm58_vm0, %v27_v63  ;;  %880 = vmatmul.mubr.msk.bf16.vlgmr.msra.gmra.mrb[12].mxu1 %vm58_vm0, %v27_v63 }
 0x7a7   :  { %v725_v12 = vpop.f32.mrb[12].mxu0  ;;  %v800_v14 = vpop.f32.mrb[12].mxu1 }
 0x7a8   :  { %v1228_v17 = vadd.f32 %v725_v12, %v686_v11  ;;  %v1230_v15 = vadd.f32 %v800_v14, %v686_v11  ;;  %v727_v19 = vpop.f32.mrb[13].mxu0  ;;  %v802_v20 = vpop.f32.mrb[13].mxu1 }
 0x7a9   :  { %v1232_v21 = vadd.f32 %v727_v19, %v686_v11  ;;  %v1234_v24 = vadd.f32 %v802_v20, %v686_v11  ;;  %v729_v25 = vpop.f32.mrb[14].mxu0  ;;  %v804_v28 = vpop.f32.mrb[14].mxu1 }
 0x7aa   :  { %v734_v31 = vand.u32 2147483647, %v1228_v17  ;;  %v809_v30 = vand.u32 2147483647, %v1230_v15  ;;  %v730_v40 = vpop.f32.mrb[15].mxu0  ;;  %v805_v43 = vpop.f32.mrb[15].mxu1 }
 0x7ab   :  { %v735_v3 = vand.u32 2147483647, %v1232_v21  ;;  %v810_v33 = vand.u32 2147483647, %v1234_v24  ;;  %v732_v22 = vmin.f32 %v1228_v17, 0.0  ;;  %v807_v29 = vmin.f32 %v1230_v15, 0.0 }
 0x7ac   :  { %v736_v38 = vsub.f32 0.0, %v734_v31  ;;  %v811_v42 = vsub.f32 0.0, %v809_v30  ;;  %v733_v37 = vmin.f32 %v1232_v21, 0.0  ;;  %v808_v14 = vmin.f32 %v1234_v24, 0.0 }
 0x7ad   :  { %v737_v41 = vsub.f32 0.0, %v735_v3  ;;  %v812_v44 = vsub.f32 0.0, %v810_v33 }
 0x7ae   :  { %v738_v45 = vmul.f32 1.442695, %v736_v38  ;;  %v813_v48 = vmul.f32 1.442695, %v811_v42 }
 0x7af   :  { %v740_v49 = vmul.f32 1.442695, %v737_v41  ;;  %v815_v51 = vmul.f32 1.442695, %v812_v44 }
 0x7b0   :  { %920 = vpow2.f32 %v738_v45 }
 0x7b1   :  { %922 = vpow2.f32 %v813_v48 }
 0x7b2   :  { %924 = vpow2.f32 %v740_v49 }
 0x7b3   :  { %926 = vpow2.f32 %v815_v51 }
 0x7ba   :  { %v921_v18 = vpop.eup %920 }
 0x7bb   :  { %v923_v52 = vpop.eup %922  ;;  %v742_v54 = vadd.f32 1.0, %v921_v18  ;;  %v745_v61 = vmul.f32 -0.5, %v921_v18  ;;  %v748_v46 = vand.u32 2147483647, %v921_v18 }
 0x7bc   :  { %v925_v55 = vpop.eup %924  ;;  %v817_v56 = vadd.f32 1.0, %v923_v52  ;;  %v820_v53 = vmul.f32 -0.5, %v923_v52  ;;  %v823_v13 = vand.u32 2147483647, %v923_v52 }
 0x7bd   :  { %v927_v47 = vpop.eup %926  ;;  %928 = vlog2.f32 %v742_v54  ;;  %v751_v60 = vadd.f32 1.0, %v925_v55  ;;  %v754_v57 = vmul.f32 -0.5, %v925_v55  ;;  %v746_v0 = vadd.f32 1.0, %v745_v61 }
 0x7be   :  { %930 = vlog2.f32 %v817_v56  ;;  %v826_v50 = vadd.f32 1.0, %v927_v47  ;;  %v829_v1 = vmul.f32 -0.5, %v927_v47  ;;  %v821_v16 = vadd.f32 1.0, %v820_v53 }
 0x7bf   :  { %932 = vlog2.f32 %v751_v60  ;;  %v755_v2 = vadd.f32 1.0, %v754_v57  ;;  %v757_v4 = vand.u32 2147483647, %v925_v55  ;;  %v747_v32 = vmul.f32 %v921_v18, %v746_v0 }
 0x7c0   :  { %934 = vlog2.f32 %v826_v50  ;;  %v830_v27 = vadd.f32 1.0, %v829_v1  ;;  %vm749_vm3 = vcmp.lt.f32.partialorder %v748_v46, 0.0004427343  ;;  %v822_v7 = vmul.f32 %v923_v52, %v821_v16 }
 0x7c1   :  { %v832_v58 = vand.u32 2147483647, %v927_v47  ;;  %vm824_vm4 = vcmp.lt.f32.partialorder %v823_v13, 0.0004427343  ;;  %v756_v9 = vmul.f32 %v925_v55, %v755_v2  ;;  %vm758_vm5 = vcmp.lt.f32.partialorder %v757_v4, 0.0004427343 }
 0x7c2   :  { %v831_v11 = vmul.f32 %v927_v47, %v830_v27 }
 0x7c3   :  { %vm833_vm6 = vcmp.lt.f32.partialorder %v832_v58, 0.0004427343 }
 0x7c7   :  { %v929_v23 = vpop.eup %928 }
 0x7c8   :  { %v931_v26 = vpop.eup %930  ;;  %v744_v5 = vmul.f32 0.6931472, %v929_v23 }
 0x7c9   :  { %v933_v34 = vpop.eup %932  ;;  %v819_v6 = vmul.f32 0.6931472, %v931_v26 }
 0x7ca   :  { %v750_v8 = vsel %vm749_vm3, %v747_v32, %v744_v5  ;;  %v753_v59 = vmul.f32 0.6931472, %v933_v34  ;;  %v935_v35 = vpop.eup %934 }
 0x7cb   :  { %v760_v39 = vsub.f32 %v732_v22, %v750_v8  ;;  %v825_v36 = vsel %vm824_vm4, %v822_v7, %v819_v6  ;;  %v828_v10 = vmul.f32 0.6931472, %v935_v35 }
 0x7cc   :  { %v835_v62 = vsub.f32 %v807_v29, %v825_v36  ;;  %v759_v63 = vsel %vm758_vm5, %v756_v9, %v753_v59 }
 0x7cd   :  { %762 = vst [vmem:[%s1260_s3] sm:$0xff] %v760_v39  ;;  %v761_v12 = vsub.f32 %v733_v37, %v759_v63  ;;  %v834_v17 = vsel %vm833_vm6, %v831_v11, %v828_v10 }
 0x7ce   :  { %881 = vst [vmem:[%s1260_s3 + $0x10] sm:$0xff] %v835_v62  ;;  %v836_v15 = vsub.f32 %v808_v14, %v834_v17 }
 0x7cf   :  { %763 = vst [vmem:[%s1260_s3 + $0x8] sm:$0xff] %v761_v12 }
 0x7d0   :  { %882 = vst [vmem:[%s1260_s3 + $0x18] sm:$0xff] %v836_v15 }

</bundles_post_ra>
